<compile_context>
chip_gen: v6e
topology: v6e:2x2x1
jax: 0.10.0
libtpu: 0.0.40
codegen_flags: <defaults>
</compile_context>

<pallas_src>
import functools
import math

import jax
import jax.numpy as jnp
import numpy as np
from jax import lax
from jax.experimental import pallas as pl
from jax.experimental.pallas import tpu as pltpu

LANES = 128
SUBLANES = 8


def _mle_kernel(n_ref, slab_ref, out_ref):
    i = pl.program_id(0)
    nb = pl.num_programs(0)
    tr = slab_ref.shape[1]                 # rows in this tile (multiple of 8)

    mu = slab_ref[0]                       # (tr, 128)
    s = slab_ref[1]
    tte_signed = slab_ref[2]               # sign bit encodes is_alive
    alive = tte_signed < 0.0
    tte = jnp.abs(tte_signed)

    s2 = jnp.exp(s)
    diff = jnp.log(tte) - mu               # log_base = e  ->  log(tte)/log(e)

    # --- log_density (is_alive == False branch) ---
    log_haz = -jnp.log(s2 + 1e-5)
    numer_d = diff * diff
    smoothie = jnp.maximum(numer_d - 1000.0 * s2, 0.0) * (1.0 / 999.0)
    # NOTE: full-precision divide kept; pl.reciprocal(..., approx=True) would
    # save one EUP push but eats into the numerical-tolerance budget.
    log_sur = -(numer_d + smoothie) / (s2 + smoothie)
    density = log_haz + log_sur

    # --- log_tailmass (is_alive == True branch) ---
    tail = jnp.log(0.5 - 0.5 * lax.erf(diff * lax.rsqrt(2.0 * s2)) + 1e-5)

    loss = jnp.where(alive, tail, density)

    # Per-lane partial of -sum(loss) over this tile's rows (lane reduction is
    # done by the wrapper).  Only the last grid block can contain padded
    # samples, so the validity mask is gated to that block.
    @pl.when(i != nb - 1)
    def _():
        out_ref[...] = -jnp.sum(loss, axis=0, keepdims=True)

    @pl.when(i == nb - 1)
    def _():
        row = lax.broadcasted_iota(jnp.int32, (tr, LANES), 0)
        lane = lax.broadcasted_iota(jnp.int32, (tr, LANES), 1)
        gidx = (i * tr + row) * LANES + lane
        masked = jnp.where(gidx < n_ref[0], loss, 0.0)
        out_ref[...] = -jnp.sum(masked, axis=0, keepdims=True)


@functools.partial(jax.jit, static_argnames=("tile_rows",))
def mle_loss(pred_params, tgts, *, tile_rows=2048):
    """pred_params: (N, 2) [mu, s]; tgts: (N, 2) [tte, is_alive]. Returns scalar."""
    n = pred_params.shape[0]
    if n == 0:                              # degenerate: empty batch
        return jnp.zeros((), jnp.float32)

    # Planar 1-D columns (never materialize a narrow-minor-dim 2-D array).
    mu = pred_params[:, 0].astype(jnp.float32)
    s = pred_params[:, 1].astype(jnp.float32)
    tte = tgts[:, 0].astype(jnp.float32)
    alive = tgts[:, 1].astype(jnp.float32)
    # Fold is_alive into the sign bit of tte (tte > 0): 3 planes instead of 4.
    tte_signed = jnp.where(alive > 0.5, -tte, tte)

    # Rows needed for n samples, (8,128)-aligned.
    r = pl.cdiv(pl.cdiv(n, LANES), SUBLANES) * SUBLANES

    # Tile rows.  Keep >= 2 grid blocks whenever there are >= 2 row-tiles of
    # work so the "parallel" grid can shard across v7x's two TensorCores.
    tr = min(tile_rows, r)
    if r >= 2 * SUBLANES and pl.cdiv(r, tr) < 2:
        tr = pl.cdiv(pl.cdiv(r, 2), SUBLANES) * SUBLANES

    # Pad rows to a multiple of tr so the last block never straddles the end
    # of the slab (no reliance on Pallas edge-block padding semantics).
    nb = pl.cdiv(r, tr)
    r_final = nb * tr
    npad = r_final * LANES
    pad = npad - n

    # Single packed slab: (3, R, 128) holding [mu, s, signed-tte] per row.
    # Padding values are safe (tte=1 -> log 0, s=0 -> s2=1) and masked anyway.
    slab = jnp.stack([
        jnp.pad(mu, (0, pad)),
        jnp.pad(s, (0, pad)),
        jnp.pad(tte_signed, (0, pad), constant_values=1.0),
    ]).reshape(3, r_final, LANES)

    n_arr = jnp.array([n], dtype=jnp.int32)

    partials = pl.pallas_call(
        _mle_kernel,
        out_shape=jax.ShapeDtypeStruct((1, nb * LANES), jnp.float32),
        grid_spec=pltpu.PrefetchScalarGridSpec(
            num_scalar_prefetch=1,
            grid=(nb,),
            # 3 * tr * 128 * 4 B = 3 MiB at tr=2048; 2x double-buffered = 6 MiB,
            # within the default scoped-VMEM limit on v5e/v6e/v7x.
            in_specs=[pl.BlockSpec((3, tr, LANES), lambda i, n_ref: (0, i, 0))],
            out_specs=pl.BlockSpec((1, LANES), lambda i, n_ref: (0, i)),
        ),
        compiler_params=pltpu.CompilerParams(
            dimension_semantics=("parallel",)),
    )(n_arr, slab)

    return jnp.sum(partials)


def _ref_loss(pred_params, tgts):
    """Float64 reference mirroring the PyTorch per-sample loop."""
    pred = np.asarray(pred_params, dtype=np.float64)
    tg = np.asarray(tgts, dtype=np.float64)
    cum = 0.0
    for (mu, s), (tte, is_alive) in zip(pred, tg):
        s2 = math.exp(s)
        if is_alive > 0.5:
            numer = math.log(tte) - mu
            loss = math.log(0.5 - 0.5 * math.erf(numer / math.sqrt(2.0 * s2)) + 1e-5)
        else:
            numer = (math.log(tte) - mu) ** 2
            smoothie = max(numer - 1000.0 * s2, 0.0) / 999.0
            loss = -math.log(s2 + 1e-5) - (numer + smoothie) / (s2 + smoothie)
        cum += loss
    return -cum


# TODO(synk): the per-sample debug print / isnan check in the PyTorch forward
# is host-side debugging only and intentionally not reproduced in the kernel.

def _make_inputs(key, n):
    k1, k2, k3, k4 = jax.random.split(key, 4)
    mu = jax.random.normal(k1, (n,), jnp.float32)
    s = 0.5 * jax.random.normal(k2, (n,), jnp.float32)
    tte = jax.random.uniform(k3, (n,), jnp.float32, minval=0.5, maxval=5.0)
    is_alive = (jax.random.uniform(k4, (n,)) > 0.5).astype(jnp.float32)
    return jnp.stack([mu, s], axis=1), jnp.stack([tte, is_alive], axis=1)


if __name__ == "__main__":
    key = jax.random.PRNGKey(0)
    k_small, k_big = jax.random.split(key)

    # Small case (matches the module's per-sample loop at batch N=8).
    pred_params, tgts = _make_inputs(k_small, 8)
    out = mle_loss(pred_params, tgts)
    jax.block_until_ready(out)
    ref = _ref_loss(pred_params, tgts)
    # f32 TPU transcendentals (erf/exp/log); log() of a small survival tail
    # amplifies ~ULP-level erf error, hence the modestly relaxed tolerance
    # against the float64 reference.
    assert jnp.allclose(out, ref, rtol=2e-3, atol=5e-2), (float(out), ref)

    # Larger case exercising multi-block grid + last-tile masking path.
    pred_params2, tgts2 = _make_inputs(k_big, 1200)
    out2 = mle_loss(pred_params2, tgts2)
    jax.block_until_ready(out2)
    ref2 = _ref_loss(pred_params2, tgts2)
    assert jnp.allclose(out2, ref2, rtol=2e-3, atol=5e-2), (float(out2), ref2)

    print("KERNEL_OK")
</pallas_src>

<mosaic_0001>
module attributes {stable_mosaic.version = 11 : i64} {
  func.func @_mle_kernel(%arg0: i32, %arg1: memref<1xi32, #tpu.memory_space<smem>>, %arg2: memref<3x8x128xf32, #tpu.memory_space<vmem>>, %arg3: memref<1x128xf32, #tpu.memory_space<vmem>>) attributes {dimension_semantics = [#tpu.dimension_semantics<parallel>], iteration_bounds = array<i64: 1>, scalar_prefetch = 1 : i64, scratch_operands = 0 : i64, tpu.core_type = #tpu.core_type<tc>, window_params = [{transform_indices = @transform_0, window_bounds = array<i64: 3, 8, 128>}, {transform_indices = @transform_1, window_bounds = array<i64: 1, 128>}]} {
    %c0 = arith.constant 0 : index
    %c0_0 = arith.constant 0 : index
    %c0_1 = arith.constant 0 : index
    %0 = vector.load %arg2[%c0, %c0_0, %c0_1] : memref<3x8x128xf32, #tpu.memory_space<vmem>>, vector<1x8x128xf32>
    %1 = vector.shape_cast %0 : vector<1x8x128xf32> to vector<8x128xf32>
    %c1 = arith.constant 1 : index
    %c0_2 = arith.constant 0 : index
    %c0_3 = arith.constant 0 : index
    %2 = vector.load %arg2[%c1, %c0_2, %c0_3] : memref<3x8x128xf32, #tpu.memory_space<vmem>>, vector<1x8x128xf32>
    %3 = vector.shape_cast %2 : vector<1x8x128xf32> to vector<8x128xf32>
    %c2 = arith.constant 2 : index
    %c0_4 = arith.constant 0 : index
    %c0_5 = arith.constant 0 : index
    %4 = vector.load %arg2[%c2, %c0_4, %c0_5] : memref<3x8x128xf32, #tpu.memory_space<vmem>>, vector<1x8x128xf32>
    %5 = vector.shape_cast %4 : vector<1x8x128xf32> to vector<8x128xf32>
    %cst = arith.constant 0.000000e+00 : f32
    %6 = vector.broadcast %cst : f32 to vector<8x128xf32>
    %7 = arith.cmpf olt, %5, %6 : vector<8x128xf32>
    %8 = math.absf %5 : vector<8x128xf32>
    %9 = math.exp %3 : vector<8x128xf32>
    %10 = math.log %8 : vector<8x128xf32>
    %11 = arith.subf %10, %1 : vector<8x128xf32>
    %cst_6 = arith.constant 9.99999974E-6 : f32
    %12 = vector.broadcast %cst_6 : f32 to vector<8x128xf32>
    %13 = arith.addf %9, %12 : vector<8x128xf32>
    %14 = math.log %13 : vector<8x128xf32>
    %cst_7 = arith.constant 0.000000e+00 : f32
    %15 = vector.broadcast %cst_7 : f32 to vector<8x128xf32>
    %16 = arith.subf %15, %14 : vector<8x128xf32>
    %17 = arith.mulf %11, %11 : vector<8x128xf32>
    %cst_8 = arith.constant 1.000000e+03 : f32
    %18 = vector.broadcast %cst_8 : f32 to vector<8x128xf32>
    %19 = arith.mulf %18, %9 : vector<8x128xf32>
    %20 = arith.subf %17, %19 : vector<8x128xf32>
    %cst_9 = arith.constant 0.000000e+00 : f32
    %21 = vector.broadcast %cst_9 : f32 to vector<8x128xf32>
    %22 = arith.maximumf %20, %21 : vector<8x128xf32>
    %cst_10 = arith.constant 0.00100100099 : f32
    %23 = vector.broadcast %cst_10 : f32 to vector<8x128xf32>
    %24 = arith.mulf %22, %23 : vector<8x128xf32>
    %25 = arith.addf %17, %24 : vector<8x128xf32>
    %cst_11 = arith.constant 0.000000e+00 : f32
    %26 = vector.broadcast %cst_11 : f32 to vector<8x128xf32>
    %27 = arith.subf %26, %25 : vector<8x128xf32>
    %28 = arith.addf %9, %24 : vector<8x128xf32>
    %29 = arith.divf %27, %28 : vector<8x128xf32>
    %30 = arith.addf %16, %29 : vector<8x128xf32>
    %cst_12 = arith.constant 2.000000e+00 : f32
    %31 = vector.broadcast %cst_12 : f32 to vector<8x128xf32>
    %32 = arith.mulf %31, %9 : vector<8x128xf32>
    %33 = math.rsqrt %32 : vector<8x128xf32>
    %34 = arith.mulf %11, %33 : vector<8x128xf32>
    %35 = math.erf %34 : vector<8x128xf32>
    %cst_13 = arith.constant 5.000000e-01 : f32
    %36 = vector.broadcast %cst_13 : f32 to vector<8x128xf32>
    %37 = arith.mulf %36, %35 : vector<8x128xf32>
    %cst_14 = arith.constant 5.000000e-01 : f32
    %38 = vector.broadcast %cst_14 : f32 to vector<8x128xf32>
    %39 = arith.subf %38, %37 : vector<8x128xf32>
    %cst_15 = arith.constant 9.99999974E-6 : f32
    %40 = vector.broadcast %cst_15 : f32 to vector<8x128xf32>
    %41 = arith.addf %39, %40 : vector<8x128xf32>
    %42 = math.log %41 : vector<8x128xf32>
    %43 = arith.select %7, %42, %30 : vector<8x128xi1>, vector<8x128xf32>
    %c0_i32 = arith.constant 0 : i32
    %44 = arith.cmpi ne, %arg0, %c0_i32 : i32
    %45 = arith.extui %44 : i1 to i32
    %c0_i32_16 = arith.constant 0 : i32
    %46 = arith.cmpi ne, %45, %c0_i32_16 : i32
    scf.if %46 {
      %cst_19 = arith.constant dense<0.000000e+00> : vector<128xf32>
      %50 = vector.multi_reduction <add>, %43, %cst_19 [0] : vector<8x128xf32> to vector<128xf32>
      %51 = vector.shape_cast %50 : vector<128xf32> to vector<1x128xf32>
      %cst_20 = arith.constant 0.000000e+00 : f32
      %52 = vector.broadcast %cst_20 : f32 to vector<1x128xf32>
      %53 = arith.subf %52, %51 : vector<1x128xf32>
      %c0_21 = arith.constant 0 : index
      %c0_22 = arith.constant 0 : index
      %54 = vector.load %arg3[%c0_21, %c0_22] : memref<1x128xf32, #tpu.memory_space<vmem>>, vector<1x128xf32>
      tpu.vector_store %arg3[%c0_21, %c0_22], %53 {strides = array<i32>} : memref<1x128xf32, #tpu.memory_space<vmem>>, vector<1x128xf32>,
    } else {
    }
    %c0_i32_17 = arith.constant 0 : i32
    %47 = arith.cmpi eq, %arg0, %c0_i32_17 : i32
    %48 = arith.extui %47 : i1 to i32
    %c0_i32_18 = arith.constant 0 : i32
    %49 = arith.cmpi ne, %48, %c0_i32_18 : i32
    scf.if %49 {
      %50 = tpu.iota {dimensions = array<i32: 0>} : vector<8x128xi32>
      %51 = tpu.iota {dimensions = array<i32: 1>} : vector<8x128xi32>
      %c8_i32 = arith.constant 8 : i32
      %52 = arith.muli %arg0, %c8_i32 : i32
      %53 = vector.broadcast %52 : i32 to vector<8x128xi32>
      %54 = arith.addi %53, %50 : vector<8x128xi32>
      %c128_i32 = arith.constant 128 : i32
      %55 = vector.broadcast %c128_i32 : i32 to vector<8x128xi32>
      %56 = arith.muli %54, %55 : vector<8x128xi32>
      %57 = arith.addi %56, %51 : vector<8x128xi32>
      %c0_19 = arith.constant 0 : index
      %58 = memref.load %arg1[%c0_19] : memref<1xi32, #tpu.memory_space<smem>>
      %59 = vector.broadcast %58 : i32 to vector<8x128xi32>
      %60 = arith.cmpi slt, %57, %59 : vector<8x128xi32>
      %cst_20 = arith.constant 0.000000e+00 : f32
      %61 = vector.broadcast %cst_20 : f32 to vector<8x128xf32>
      %62 = arith.select %60, %43, %61 : vector<8x128xi1>, vector<8x128xf32>
      %cst_21 = arith.constant dense<0.000000e+00> : vector<128xf32>
      %63 = vector.multi_reduction <add>, %62, %cst_21 [0] : vector<8x128xf32> to vector<128xf32>
      %64 = vector.shape_cast %63 : vector<128xf32> to vector<1x128xf32>
      %cst_22 = arith.constant 0.000000e+00 : f32
      %65 = vector.broadcast %cst_22 : f32 to vector<1x128xf32>
      %66 = arith.subf %65, %64 : vector<1x128xf32>
      %c0_23 = arith.constant 0 : index
      %c0_24 = arith.constant 0 : index
      %67 = vector.load %arg3[%c0_23, %c0_24] : memref<1x128xf32, #tpu.memory_space<vmem>>, vector<1x128xf32>
      tpu.vector_store %arg3[%c0_23, %c0_24], %66 {strides = array<i32>} : memref<1x128xf32, #tpu.memory_space<vmem>>, vector<1x128xf32>,
    } else {
    }
    return
  }
  func.func @transform_0(%arg0: i32, %arg1: memref<1xi32, #tpu.memory_space<smem>>) -> (i32, i32, i32) {
    %c0_i32 = arith.constant 0 : i32
    %c0_i32_0 = arith.constant 0 : i32
    %c0_i32_1 = arith.constant 0 : i32
    return %c0_i32, %arg0, %c0_i32_0 : i32, i32, i32
  }
  func.func @transform_1(%arg0: i32, %arg1: memref<1xi32, #tpu.memory_space<smem>>) -> (i32, i32) {
    %c0_i32 = arith.constant 0 : i32
    %c0_i32_0 = arith.constant 0 : i32
    return %c0_i32, %arg0 : i32, i32
  }
}

</mosaic_0001>

<bundles_post_ra>
// kernel: mle_loss.1
= control target key start
LH: loop header
LB: loop body
LE: loop exit
PB: predicated region body
PF: predicated region fallthrough
CT: control target
= control target key end

     0   :  { %v63_v23 = vlaneseq  ;;  %s134_s1 = inlined_call_operand.vmem [shape: f32[3,8,128], index: 1, kind: input, shape index: {}]   ;;  %s135_s0 = inlined_call_operand.<no memory space> [shape: s32[1], index: 0, kind: input, shape index: {}]   ;;  %s136_s2 = inlined_call_operand.vmem [shape: f32[1,128], index: 2, kind: output, shape index: {}]  }
   0x1   :  { %v88_v0 = vld [vmem:[%s134_s1 + $0x8] sm:$0xff]  ;;  %v89_v1 = vld [vmem:[%s134_s1 + $0x10] sm:$0xff]  ;;  %v10_v8 = vld [vmem:[%s134_s1] sm:$0xff]  ;;  %v73_v35 = vstv %s135_s0 }
   0x2   :  { %v17_v2 = vmul.f32 1.442695, %v88_v0  ;;  %v16_v3 = vand.u32 2147483647, %v89_v1  ;;  %v64_v26 = vshrl.u32 %v63_v23, 7  ;;  %v66_v30 = vand.u32 127, %v63_v23 }
   0x3   :  { %vm15_vm0 = vcmp.lt.f32.partialorder %v89_v1, 0.0 }
   0x4   :  { %90 = vpow2.f32 %v17_v2  ;;  %v70_v31 = vmul.u32 128, %v64_v26 }
   0x5   :  { %92 = vlog2.f32 %v16_v3 }
   0x6   :  { %v71_v34 = vadd.s32 %v70_v31, %v66_v30 }
   0x8   :  { %vm74_vm1 = vcmp.lt.s32.totalorder %v71_v34, %v73_v35 }
  0x11   :  { %v91_v4 = vpop.eup %90 }
  0x12   :  { %v37_v5 = vmul.f32 2.0, %v91_v4  ;;  %v93_v6 = vpop.eup %92  ;;  %v27_v11 = vmul.f32 1000.0, %v91_v4  ;;  %v22_v16 = vadd.f32 1e-05, %v91_v4 }
  0x13   :  { %v20_v7 = vmul.f32 0.6931472, %v93_v6 }
  0x14   :  { %94 = vrsqrt.f32 %v37_v5 }
  0x15   :  { %v21_v9 = vsub.f32 %v20_v7, %v10_v8 }
  0x17   :  { %v26_v10 = vmul.f32 %v21_v9, %v21_v9 }
  0x19   :  { %v28_v12 = vsub.f32 %v26_v10, %v27_v11 }
  0x1b   :  { %v29_v15 = vmax.f32 %v28_v12, 0.0 }
  0x1d   :  { %v30_v17 = vmul.f32 0.001001001, %v29_v15 }
  0x1f   :  { %v33_v18 = vadd.f32 %v91_v4, %v30_v17  ;;  %v31_v24 = vadd.f32 %v30_v17, %v26_v10 }
  0x21   :  { %v95_v13 = vpop.eup %94  ;;  %v32_v28 = vsub.f32 0.0, %v31_v24 }
  0x22   :  { %v39_v14 = vmul.f32 %v95_v13, %v21_v9 }
  0x24   :  { %96 = verf.f32 %v39_v14 }
  0x25   :  { %98 = vlog2.f32 %v22_v16 }
  0x26   :  { %100 = vrcp.f32 %v33_v18 }
  0x31   :  { %v97_v19 = vpop.eup %96 }
  0x32   :  { %v41_v20 = vmul.f32 0.5, %v97_v19  ;;  %v99_v25 = vpop.eup %98 }
  0x33   :  { %v24_v27 = vmul.f32 0.6931472, %v99_v25  ;;  %v101_v29 = vpop.eup %100 }
  0x34   :  { %v42_v21 = vsub.f32 0.5, %v41_v20  ;;  %v35_v33 = vmul.f32 %v101_v29, %v32_v28 }
  0x35   :  { %v25_v32 = vsub.f32 0.0, %v24_v27 }
  0x36   :  { %v43_v22 = vadd.f32 1e-05, %v42_v21 }
  0x37   :  { %v36_v36 = vadd.f32 %v35_v33, %v25_v32 }
  0x38   :  { %102 = vlog2.f32 %v43_v22 }
  0x45   :  { %v103_v37 = vpop.eup %102 }
  0x46   :  { %v45_v38 = vmul.f32 0.6931472, %v103_v37 }
  0x48   :  { %v46_v39 = vsel %vm15_vm0, %v45_v38, %v36_v36 }
  0x49   :  { %v75_v40 = vsel %vm74_vm1, %v46_v39, 0.0 }
  0x4a   :  { %v76_v41 = vrot.slane %v75_v40, 4 }
  0x4c   :  { %v77_v42 = vadd.f32 %v76_v41, %v75_v40 }
  0x4e   :  { %v78_v43 = vrot.slane %v77_v42, 2 }
  0x50   :  { %v79_v44 = vadd.f32 %v78_v43, %v77_v42 }
  0x52   :  { %v80_v45 = vrot.slane %v79_v44, 1 }
  0x54   :  { %v81_v46 = vadd.f32 %v80_v45, %v79_v44 }
  0x56   :  { %v82_v47 = vsub.f32 0.0, %v81_v46 }
  0x58   :  { %83 = vst [vmem:[%s136_s2] sm:$0x1] %v82_v47 }

</bundles_post_ra>
